<compile_context>
chip_gen: v5e
topology: v5e:2x2
jax: 0.10.0
libtpu: 0.0.40
codegen_flags: <defaults>
</compile_context>

<pallas_src>
import functools

import jax
import jax.numpy as jnp
from jax.experimental import pallas as pl
from jax.experimental.pallas import tpu as pltpu


def vae_kernel(p_ref, w_ref, eps_ref, o_ref, *, n_imgs, hw, cout, cp):
    """Single-step fused VAE forward.

    p_ref:   (9*Cin + 1, N*HW)  im2col patches + constant-1 bias row
                                (taps*Cin on sublanes, n*HW + pixel on lanes)
    w_ref:   (2*Cp, 9*Cin + 1)  both conv heads' weights, bias in last column,
                                each head zero-padded from Cout to Cp rows
    eps_ref: (N, Cout, HW)      pre-sampled N(0,1) noise (natural layout)
    o_ref:   (N, Cout, HW)
    """
    # One MXU GEMM covering both heads, all 9 taps, the bias and the whole batch.
    acc = jnp.dot(w_ref[...], p_ref[...],
                  preferred_element_type=jnp.float32)        # (2*Cp, N*HW)
    h = jnp.maximum(acc, 0.0)                                # relu, both heads

    mu = h[:cout]                                            # rows [0, Cout)
    std = jnp.exp(0.5 * h[cp:cp + cout])                     # rows [Cp, Cp+Cout)

    # Per-image epilogue + store (static unroll; HW is a multiple of 128 so
    # every lane slice is vreg-aligned and every store is lane-dense).
    for n in range(n_imgs):
        lo = n * hw
        z = eps_ref[n] * std[:, lo:lo + hw] + mu[:, lo:lo + hw]
        o_ref[n] = jax.nn.sigmoid(z)


def _fuse_head(w, b, cp):
    """(9, Cin, Cout) weights + (Cout,) bias -> (Cp, 9*Cin + 1) GEMM rows."""
    cout = w.shape[-1]
    wt = jnp.transpose(w, (2, 0, 1)).reshape(cout, -1)       # K index = tap*Cin + ci
    wt = jnp.concatenate([wt, b.reshape(cout, 1)], axis=1)   # bias -> last K column
    return jnp.pad(wt, ((0, cp - cout), (0, 0)))             # pad rows to Cp


@jax.jit
def vae_forward(x_nchw, w1, b1, w2, b2, eps):
    """x_nchw: (N, Cin, H, W). w*: (9, Cin, Cout). b*: (Cout,).
    eps: (N, Cout, H, W).  Returns (N, Cout, H, W) (PyTorch NCHW)."""
    N, Cin, H, W = x_nchw.shape
    Cout = w1.shape[-1]
    Cp = ((Cout + 7) // 8) * 8            # sublane-aligned per-head row count
    HW = H * W
    K = 9 * Cin + 1                       # 9 taps * Cin + constant-1 bias row

    # --- im2col in the wrapper: (K, N*HW), batch*pixels lane-dense ------------
    # TODO(synk): at UHD sizes, do this inside the kernel from a halo'd slab.
    x_pad = jnp.pad(x_nchw, ((0, 0), (0, 0), (1, 1), (1, 1)))
    taps = jnp.stack([x_pad[:, :, ky:ky + H, kx:kx + W]
                      for ky in range(3) for kx in range(3)], axis=0)   # (9,N,Cin,H,W)
    patches = jnp.transpose(taps, (0, 2, 1, 3, 4)).reshape(9 * Cin, N * HW)
    patches = jnp.concatenate(
        [patches, jnp.ones((1, N * HW), patches.dtype)], axis=0)        # bias row

    # --- fuse the two conv heads (+ biases) into one GEMM operand -------------
    w_f = jnp.concatenate([_fuse_head(w1, b1, Cp),
                           _fuse_head(w2, b2, Cp)], axis=0)             # (2*Cp, K)

    eps_k = eps.reshape(N, Cout, HW)      # contiguous reshape only

    out_k = pl.pallas_call(
        functools.partial(vae_kernel, n_imgs=N, hw=HW, cout=Cout, cp=Cp),
        out_shape=jax.ShapeDtypeStruct((N, Cout, HW), jnp.float32),
        grid=(1,),
        in_specs=[
            pl.BlockSpec((K, N * HW), lambda i: (0, 0)),
            pl.BlockSpec((2 * Cp, K), lambda i: (0, 0)),
            pl.BlockSpec((N, Cout, HW), lambda i: (0, 0, 0)),
        ],
        out_specs=pl.BlockSpec((N, Cout, HW), lambda i: (0, 0, 0)),
        compiler_params=pltpu.CompilerParams(
            dimension_semantics=("arbitrary",)),
    )(patches, w_f, eps_k)

    # Contiguous reshape only — no transpose, no un-pad slice.
    return out_k.reshape(N, Cout, H, W)


def vae_reference(x_nchw, w1, b1, w2, b2, eps):
    """Pure-JAX reference (same math) for a correctness check."""
    N, Cin, H, W = x_nchw.shape
    Cout = w1.shape[-1]
    w1_hwio = w1.reshape(3, 3, Cin, Cout)
    w2_hwio = w2.reshape(3, 3, Cin, Cout)
    dn = jax.lax.conv_dimension_numbers(x_nchw.shape, w1_hwio.shape,
                                        ("NCHW", "HWIO", "NCHW"))
    c1 = jax.lax.conv_general_dilated(x_nchw, w1_hwio, (1, 1), "SAME",
                                      dimension_numbers=dn) + b1.reshape(1, Cout, 1, 1)
    c2 = jax.lax.conv_general_dilated(x_nchw, w2_hwio, (1, 1), "SAME",
                                      dimension_numbers=dn) + b2.reshape(1, Cout, 1, 1)
    mu, log_var = jnp.maximum(c1, 0.0), jnp.maximum(c2, 0.0)
    z = eps * jnp.exp(0.5 * log_var) + mu
    return jax.nn.sigmoid(z)


if __name__ == "__main__":
    # Shapes consistent with the module: in_channels=4, kernel_size=3
    # -> out_channels = 2 * 3 * 3 = 18.
    N, Cin, H, W = 2, 4, 16, 16
    Cout = 2 * 3 * 3

    key = jax.random.PRNGKey(0)
    kx, kw1, kb1, kw2, kb2, keps = jax.random.split(key, 6)

    x = jax.random.normal(kx, (N, Cin, H, W), jnp.float32)

    # Deterministic parameter init (synthetic weights, not a checkpoint).
    w1 = jax.random.normal(kw1, (9, Cin, Cout), jnp.float32) * 0.1
    b1 = jax.random.normal(kb1, (Cout,), jnp.float32) * 0.1
    w2 = jax.random.normal(kw2, (9, Cin, Cout), jnp.float32) * 0.1
    b2 = jax.random.normal(kb2, (Cout,), jnp.float32) * 0.1

    # eps corresponds to torch.randn_like(std); sampled once with a fixed key.
    eps = jax.random.normal(keps, (N, Cout, H, W), jnp.float32)

    out = jax.block_until_ready(vae_forward(x, w1, b1, w2, b2, eps))
    ref = jax.block_until_ready(vae_reference(x, w1, b1, w2, b2, eps))

    assert out.shape == (N, Cout, H, W), out.shape
    assert bool(jnp.all(jnp.isfinite(out)))
    assert bool(jnp.allclose(out, ref, atol=1e-5, rtol=1e-5)), \
        float(jnp.max(jnp.abs(out - ref)))

    print("KERNEL_OK")
</pallas_src>

<mosaic_0001>
module attributes {stable_mosaic.version = 11 : i64} {
  func.func @vae_kernel(%arg0: i32, %arg1: memref<37x512xf32, #tpu.memory_space<vmem>>, %arg2: memref<48x37xf32, #tpu.memory_space<vmem>>, %arg3: memref<2x18x256xf32, #tpu.memory_space<vmem>>, %arg4: memref<2x18x256xf32, #tpu.memory_space<vmem>>) attributes {dimension_semantics = [#tpu.dimension_semantics<arbitrary>], iteration_bounds = array<i64: 1>, scalar_prefetch = 0 : i64, scratch_operands = 0 : i64, tpu.core_type = #tpu.core_type<tc>, window_params = [{pipeline_mode = #tpu.pipeline_mode<synchronous>, transform_indices = @transform_0, window_bounds = array<i64: 37, 512>}, {pipeline_mode = #tpu.pipeline_mode<synchronous>, transform_indices = @transform_1, window_bounds = array<i64: 48, 37>}, {pipeline_mode = #tpu.pipeline_mode<synchronous>, transform_indices = @transform_2, window_bounds = array<i64: 2, 18, 256>}, {pipeline_mode = #tpu.pipeline_mode<synchronous>, transform_indices = @transform_3, window_bounds = array<i64: 2, 18, 256>}]} {
    %c0 = arith.constant 0 : index
    %c0_0 = arith.constant 0 : index
    %0 = vector.load %arg2[%c0, %c0_0] : memref<48x37xf32, #tpu.memory_space<vmem>>, vector<48x37xf32>
    %c0_1 = arith.constant 0 : index
    %c0_2 = arith.constant 0 : index
    %1 = vector.load %arg1[%c0_1, %c0_2] : memref<37x512xf32, #tpu.memory_space<vmem>>, vector<37x512xf32>
    %cst = arith.constant dense<0.000000e+00> : vector<48x512xf32>
    %2 = tpu.matmul %0, %1, %cst {dimension_numbers = #tpu.dot_dimension_numbers<[1], [0], [0], [1], [0, 0, 1, 1], [], []>} : vector<48x37xf32>, vector<37x512xf32>, vector<48x512xf32> -> vector<48x512xf32>
    %cst_3 = arith.constant 0.000000e+00 : f32
    %3 = vector.broadcast %cst_3 : f32 to vector<48x512xf32>
    %4 = arith.maximumf %2, %3 : vector<48x512xf32>
    %5 = vector.extract_strided_slice %4 {offsets = [0, 0], sizes = [18, 512], strides = [1, 1]} : vector<48x512xf32> to vector<18x512xf32>
    %6 = vector.extract_strided_slice %4 {offsets = [24, 0], sizes = [18, 512], strides = [1, 1]} : vector<48x512xf32> to vector<18x512xf32>
    %cst_4 = arith.constant 5.000000e-01 : f32
    %7 = vector.broadcast %cst_4 : f32 to vector<18x512xf32>
    %8 = arith.mulf %7, %6 : vector<18x512xf32>
    %9 = math.exp %8 : vector<18x512xf32>
    %c0_5 = arith.constant 0 : index
    %c0_6 = arith.constant 0 : index
    %c0_7 = arith.constant 0 : index
    %10 = vector.load %arg3[%c0_5, %c0_6, %c0_7] : memref<2x18x256xf32, #tpu.memory_space<vmem>>, vector<1x18x256xf32>
    %11 = vector.shape_cast %10 : vector<1x18x256xf32> to vector<18x256xf32>
    %12 = vector.extract_strided_slice %9 {offsets = [0, 0], sizes = [18, 256], strides = [1, 1]} : vector<18x512xf32> to vector<18x256xf32>
    %13 = arith.mulf %11, %12 : vector<18x256xf32>
    %14 = vector.extract_strided_slice %5 {offsets = [0, 0], sizes = [18, 256], strides = [1, 1]} : vector<18x512xf32> to vector<18x256xf32>
    %15 = arith.addf %13, %14 : vector<18x256xf32>
    %16 = arith.negf %15 : vector<18x256xf32>
    %17 = math.exp %16 : vector<18x256xf32>
    %cst_8 = arith.constant 1.000000e+00 : f32
    %18 = vector.broadcast %cst_8 : f32 to vector<18x256xf32>
    %19 = arith.addf %18, %17 : vector<18x256xf32>
    %20 = arith.divf %18, %19 : vector<18x256xf32>
    %c0_9 = arith.constant 0 : index
    %c0_10 = arith.constant 0 : index
    %c0_11 = arith.constant 0 : index
    %21 = vector.load %arg4[%c0_9, %c0_10, %c0_11] : memref<2x18x256xf32, #tpu.memory_space<vmem>>, vector<1x18x256xf32>
    %22 = vector.shape_cast %21 : vector<1x18x256xf32> to vector<18x256xf32>
    %23 = vector.shape_cast %20 : vector<18x256xf32> to vector<1x18x256xf32>
    tpu.vector_store %arg4[%c0_9, %c0_10, %c0_11], %23 {strides = array<i32>} : memref<2x18x256xf32, #tpu.memory_space<vmem>>, vector<1x18x256xf32>,
    %c1 = arith.constant 1 : index
    %c0_12 = arith.constant 0 : index
    %c0_13 = arith.constant 0 : index
    %24 = vector.load %arg3[%c1, %c0_12, %c0_13] : memref<2x18x256xf32, #tpu.memory_space<vmem>>, vector<1x18x256xf32>
    %25 = vector.shape_cast %24 : vector<1x18x256xf32> to vector<18x256xf32>
    %26 = vector.extract_strided_slice %9 {offsets = [0, 256], sizes = [18, 256], strides = [1, 1]} : vector<18x512xf32> to vector<18x256xf32>
    %27 = arith.mulf %25, %26 : vector<18x256xf32>
    %28 = vector.extract_strided_slice %5 {offsets = [0, 256], sizes = [18, 256], strides = [1, 1]} : vector<18x512xf32> to vector<18x256xf32>
    %29 = arith.addf %27, %28 : vector<18x256xf32>
    %30 = arith.negf %29 : vector<18x256xf32>
    %31 = math.exp %30 : vector<18x256xf32>
    %cst_14 = arith.constant 1.000000e+00 : f32
    %32 = vector.broadcast %cst_14 : f32 to vector<18x256xf32>
    %33 = arith.addf %32, %31 : vector<18x256xf32>
    %34 = arith.divf %32, %33 : vector<18x256xf32>
    %c1_15 = arith.constant 1 : index
    %c0_16 = arith.constant 0 : index
    %c0_17 = arith.constant 0 : index
    %35 = vector.load %arg4[%c1_15, %c0_16, %c0_17] : memref<2x18x256xf32, #tpu.memory_space<vmem>>, vector<1x18x256xf32>
    %36 = vector.shape_cast %35 : vector<1x18x256xf32> to vector<18x256xf32>
    %37 = vector.shape_cast %34 : vector<18x256xf32> to vector<1x18x256xf32>
    tpu.vector_store %arg4[%c1_15, %c0_16, %c0_17], %37 {strides = array<i32>} : memref<2x18x256xf32, #tpu.memory_space<vmem>>, vector<1x18x256xf32>,
    return
  }
  func.func @transform_0(%arg0: i32) -> (i32, i32) {
    %c0_i32 = arith.constant 0 : i32
    %c0_i32_0 = arith.constant 0 : i32
    %c0_i32_1 = arith.constant 0 : i32
    return %c0_i32, %c0_i32_0 : i32, i32
  }
  func.func @transform_1(%arg0: i32) -> (i32, i32) {
    %c0_i32 = arith.constant 0 : i32
    %c0_i32_0 = arith.constant 0 : i32
    %c0_i32_1 = arith.constant 0 : i32
    return %c0_i32, %c0_i32_0 : i32, i32
  }
  func.func @transform_2(%arg0: i32) -> (i32, i32, i32) {
    %c0_i32 = arith.constant 0 : i32
    %c0_i32_0 = arith.constant 0 : i32
    %c0_i32_1 = arith.constant 0 : i32
    %c0_i32_2 = arith.constant 0 : i32
    return %c0_i32, %c0_i32_0, %c0_i32_1 : i32, i32, i32
  }
  func.func @transform_3(%arg0: i32) -> (i32, i32, i32) {
    %c0_i32 = arith.constant 0 : i32
    %c0_i32_0 = arith.constant 0 : i32
    %c0_i32_1 = arith.constant 0 : i32
    %c0_i32_2 = arith.constant 0 : i32
    return %c0_i32, %c0_i32_0, %c0_i32_1 : i32, i32, i32
  }
}

</mosaic_0001>

<bundles_post_ra>
// kernel: vae_forward.1
= control target key start
LH: loop header
LB: loop body
LE: loop exit
PB: predicated region body
PF: predicated region fallthrough
CT: control target
= control target key end

     0   :  { %vm59_vm0 = vcmask 1044480   ;;  %vm40_vm1 = vcmask 302080   ;;  %s1017_s0 = inlined_call_operand.vmem [shape: f32[37,512], index: 0, kind: input, shape index: {}]   ;;  %s1018_s1 = inlined_call_operand.vmem [shape: f32[48,37], index: 1, kind: input, shape index: {}]   ;;  %s1019_s2 = inlined_call_operand.vmem [shape: f32[2,18,256], index: 2, kind: input, shape index: {}]   ;;  %s1020_s3 = inlined_call_operand.vmem [shape: f32[2,18,256], index: 3, kind: output, shape index: {}]  }
   0x1   :  { %v36_v0 = vld [vmem:[%s1017_s0 + $0x80] sm:$0x1f]  ;;  %v37_v1 = vld [vmem:[%s1017_s0 + $0x88] sm:$0x1f]  ;;  %v38_v2 = vld [vmem:[%s1017_s0 + $0x90] sm:$0x1f] }
   0x2   :  { %554 = vmatpush.msk.msra.mxu0 %vm59_vm0, %v36_v0  ;;  %561 = vmatpush.msk.msra.mxu1 %vm59_vm0, %v37_v1  ;;  %v39_v3 = vld [vmem:[%s1017_s0 + $0x98] sm:$0x1f]  ;;  %v32_v4 = vld [vmem:[%s1017_s0 + $0x60] sm:$0xff]  ;;  %v33_v5 = vld [vmem:[%s1017_s0 + $0x68] sm:$0xff] }
   0x3   :  { %568 = vmatpush.msk.msra.mxu2 %vm59_vm0, %v38_v2  ;;  %575 = vmatpush.msk.msra.mxu3 %vm59_vm0, %v39_v3  ;;  %v34_v6 = vld [vmem:[%s1017_s0 + $0x70] sm:$0xff]  ;;  %v35_v7 = vld [vmem:[%s1017_s0 + $0x78] sm:$0xff]  ;;  %v28_v8 = vld [vmem:[%s1017_s0 + $0x40] sm:$0xff] }
   0x4   :  { %84 = vmatpush.msra.mxu0 %v32_v4  ;;  %119 = vmatpush.msra.mxu1 %v33_v5  ;;  %v29_v9 = vld [vmem:[%s1017_s0 + $0x48] sm:$0xff]  ;;  %v30_v10 = vld [vmem:[%s1017_s0 + $0x50] sm:$0xff]  ;;  %v31_v11 = vld [vmem:[%s1017_s0 + $0x58] sm:$0xff] }
   0x5   :  { %154 = vmatpush.msra.mxu2 %v34_v6  ;;  %189 = vmatpush.msra.mxu3 %v35_v7  ;;  %v24_v12 = vld [vmem:[%s1017_s0 + $0x20] sm:$0xff]  ;;  %v25_v13 = vld [vmem:[%s1017_s0 + $0x28] sm:$0xff]  ;;  %v26_v14 = vld [vmem:[%s1017_s0 + $0x30] sm:$0xff] }
   0x6   :  { %85 = vmatpush.msra.mxu0 %v28_v8  ;;  %120 = vmatpush.msra.mxu1 %v29_v9  ;;  %v27_v15 = vld [vmem:[%s1017_s0 + $0x38] sm:$0xff]  ;;  %v20_v16 = vld [vmem:[%s1017_s0] sm:$0xff]  ;;  %v21_v17 = vld [vmem:[%s1017_s0 + $0x8] sm:$0xff] }
   0x7   :  { %155 = vmatpush.msra.mxu2 %v30_v10  ;;  %190 = vmatpush.msra.mxu3 %v31_v11  ;;  %v22_v18 = vld [vmem:[%s1017_s0 + $0x10] sm:$0xff]  ;;  %v23_v19 = vld [vmem:[%s1017_s0 + $0x18] sm:$0xff]  ;;  %v14_v20 = vld [vmem:[%s1018_s1] sm:$0xff] }
   0x8   :  { %86 = vmatpush.msra.mxu0 %v24_v12  ;;  %121 = vmatpush.msra.mxu1 %v25_v13  ;;  %v15_v21 = vld [vmem:[%s1018_s1 + $0x8] sm:$0xff]  ;;  %v16_v22 = vld [vmem:[%s1018_s1 + $0x10] sm:$0xff]  ;;  %v17_v23 = vld [vmem:[%s1018_s1 + $0x18] sm:$0xff] }
   0x9   :  { %156 = vmatpush.msra.mxu2 %v26_v14  ;;  %191 = vmatpush.msra.mxu3 %v27_v15  ;;  %v18_v24 = vld [vmem:[%s1018_s1 + $0x20] sm:$0xff]  ;;  %v19_v25 = vld [vmem:[%s1018_s1 + $0x28] sm:$0xff] }
   0xa   :  { %87 = vmatpush.msra.mxu0 %v20_v16  ;;  %122 = vmatpush.msra.mxu1 %v21_v17  ;;  %v272_v56 = vld [vmem:[%s1019_s2] sm:$0xff]  ;;  %v273_v59 = vld [vmem:[%s1019_s2 + $0x8] sm:$0xff]  ;;  %v588_v17 = vld [vmem:[%s1019_s2 + $0x30] sm:$0xff] }
   0xb   :  { %157 = vmatpush.msra.mxu2 %v22_v18  ;;  %192 = vmatpush.msra.mxu3 %v23_v19 }
   0xc   :  { %555 = vmatmul.msk.f32.vlgmr.msra.gmra.mxu0 %vm40_vm1, %v14_v20  ;;  %562 = vmatmul.msk.f32.vlgmr.msra.gmra.mxu1 %vm40_vm1, %v14_v20 }
   0xd   :  { %569 = vmatmul.msk.f32.vlgmr.msra.gmra.mxu2 %vm40_vm1, %v14_v20  ;;  %576 = vmatmul.msk.f32.vlgmr.msra.gmra.mxu3 %vm40_vm1, %v14_v20 }
  0x14   :  { %556 = vmatmul.msk.f32.gmra.mxu0 %vm40_vm1, %v15_v21  ;;  %563 = vmatmul.msk.f32.gmra.mxu1 %vm40_vm1, %v15_v21 }
  0x15   :  { %570 = vmatmul.msk.f32.gmra.mxu2 %vm40_vm1, %v15_v21  ;;  %577 = vmatmul.msk.f32.gmra.mxu3 %vm40_vm1, %v15_v21  ;;  %v589_v21 = vld [vmem:[%s1019_s2 + $0x38] sm:$0xff] }
  0x1c   :  { %557 = vmatmul.msk.f32.gmra.mxu0 %vm40_vm1, %v16_v22  ;;  %564 = vmatmul.msk.f32.gmra.mxu1 %vm40_vm1, %v16_v22 }
  0x1d   :  { %571 = vmatmul.msk.f32.gmra.mxu2 %vm40_vm1, %v16_v22  ;;  %578 = vmatmul.msk.f32.gmra.mxu3 %vm40_vm1, %v16_v22 }
  0x24   :  { %558 = vmatmul.msk.f32.gmra.mxu0 %vm40_vm1, %v17_v23  ;;  %565 = vmatmul.msk.f32.gmra.mxu1 %vm40_vm1, %v17_v23 }
  0x25   :  { %572 = vmatmul.msk.f32.gmra.mxu2 %vm40_vm1, %v17_v23  ;;  %579 = vmatmul.msk.f32.gmra.mxu3 %vm40_vm1, %v17_v23 }
  0x2c   :  { %559 = vmatmul.msk.f32.gmra.mxu0 %vm40_vm1, %v18_v24  ;;  %566 = vmatmul.msk.f32.gmra.mxu1 %vm40_vm1, %v18_v24 }
  0x2d   :  { %573 = vmatmul.msk.f32.gmra.mxu2 %vm40_vm1, %v18_v24  ;;  %580 = vmatmul.msk.f32.gmra.mxu3 %vm40_vm1, %v18_v24 }
  0x34   :  { %560 = vmatmul.msk.f32.gmra.mxu0 %vm40_vm1, %v19_v25  ;;  %567 = vmatmul.msk.f32.gmra.mxu1 %vm40_vm1, %v19_v25 }
  0x35   :  { %574 = vmatmul.msk.f32.gmra.mxu2 %vm40_vm1, %v19_v25  ;;  %581 = vmatmul.msk.f32.gmra.mxu3 %vm40_vm1, %v19_v25  ;;  %v274_v25 = vld [vmem:[%s1019_s2 + $0x10] sm:$0xff] }
  0x89   :  { %v89_v26 = vpop.f32.mrf.mxu0  ;;  %v124_v27 = vpop.f32.mrf.mxu1 }
  0x8a   :  { %v212_v2 = vmax.f32 %v89_v26, 0.0  ;;  %v213_v4 = vmax.f32 %v124_v27, 0.0 }
  0x90   :  { %v800_v28 = vpop.f32.mrf.mxu2  ;;  %v802_v29 = vpop.f32.mrf.mxu3 }
  0x91   :  { %v804_v30 = vpop.f32.mrf.mxu0  ;;  %v806_v31 = vpop.f32.mrf.mxu1 }
  0x98   :  { %v808_v32 = vpop.f32.mrf.mxu2  ;;  %v810_v33 = vpop.f32.mrf.mxu3 }
  0x99   :  { %v812_v34 = vpop.f32.mrf.mxu0  ;;  %v814_v35 = vpop.f32.mrf.mxu1 }
  0xa0   :  { %v816_v36 = vpop.f32.mrf.mxu2  ;;  %v818_v37 = vpop.f32.mrf.mxu3 }
  0xa1   :  { %v98_v38 = vpop.f32.mrf.mxu0  ;;  %v133_v39 = vpop.f32.mrf.mxu1 }
  0xa2   :  { %v224_v40 = vmax.f32 %v98_v38, 0.0  ;;  %v225_v41 = vmax.f32 %v133_v39, 0.0  ;;  %v214_v39 = vmax.f32 %v800_v28, 0.0  ;;  %v217_v28 = vmax.f32 %v806_v31, 0.0 }
  0xa4   :  { %v236_v42 = vmul.f32 0.5, %v224_v40  ;;  %v237_v43 = vmul.f32 0.5, %v225_v41  ;;  %v275_v41 = vld [vmem:[%s1019_s2 + $0x18] sm:$0xff] }
  0xa6   :  { %v248_v44 = vmul.f32 1.442695, %v236_v42  ;;  %v250_v45 = vmul.f32 1.442695, %v237_v43 }
  0xa8   :  { %606 = vpow2.f32 %v248_v44  ;;  %v168_v46 = vpop.f32.mrf.mxu2  ;;  %v203_v47 = vpop.f32.mrf.mxu3  ;;  %v215_v44 = vmax.f32 %v802_v29, 0.0 }
  0xa9   :  { %608 = vpow2.f32 %v250_v45  ;;  %v226_v48 = vmax.f32 %v168_v46, 0.0  ;;  %v227_v49 = vmax.f32 %v203_v47, 0.0  ;;  %v101_v50 = vpop.f32.mrf.mxu0  ;;  %v136_v51 = vpop.f32.mrf.mxu1 }
  0xaa   :  { %v228_v52 = vmax.f32 %v101_v50, 0.0  ;;  %v229_v53 = vmax.f32 %v136_v51, 0.0 }
  0xab   :  { %v238_v54 = vmul.f32 0.5, %v226_v48  ;;  %v239_v55 = vmul.f32 0.5, %v227_v49  ;;  %v216_v48 = vmax.f32 %v804_v30, 0.0 }
  0xac   :  { %v240_v57 = vmul.f32 0.5, %v228_v52  ;;  %v241_v58 = vmul.f32 0.5, %v229_v53 }
  0xad   :  { %v252_v60 = vmul.f32 1.442695, %v238_v54  ;;  %v254_v61 = vmul.f32 1.442695, %v239_v55 }
  0xae   :  { %v607_v62 = vpop.eup %606  ;;  %v256_v63 = vmul.f32 1.442695, %v240_v57  ;;  %v258_v0 = vmul.f32 1.442695, %v241_v58 }
  0xaf   :  { %v609_v1 = vpop.eup %608  ;;  %v278_v3 = vmul.f32 %v607_v62, %v272_v56  ;;  %610 = vpow2.f32 %v252_v60 }
  0xb0   :  { %v279_v5 = vmul.f32 %v609_v1, %v273_v59  ;;  %612 = vpow2.f32 %v254_v61  ;;  %v171_v6 = vpop.f32.mrf.mxu2  ;;  %v206_v7 = vpop.f32.mrf.mxu3 }
  0xb1   :  { %v284_v8 = vadd.f32 %v278_v3, %v212_v2  ;;  %614 = vpow2.f32 %v256_v63  ;;  %v230_v9 = vmax.f32 %v171_v6, 0.0  ;;  %v231_v10 = vmax.f32 %v206_v7, 0.0  ;;  %v104_v11 = vpop.f32.mrf.mxu0  ;;  %v139_v12 = vpop.f32.mrf.mxu1 }
  0xb2   :  { %v285_v13 = vadd.f32 %v279_v5, %v213_v4  ;;  %616 = vpow2.f32 %v258_v0  ;;  %v232_v14 = vmax.f32 %v104_v11, 0.0  ;;  %v233_v15 = vmax.f32 %v139_v12, 0.0  ;;  %v590_v0 = vld [vmem:[%s1019_s2 + $0x40] sm:$0xff] }
  0xb3   :  { %v582_v16 = vmul.f32 -1.442695, %v284_v8  ;;  %v242_v18 = vmul.f32 0.5, %v230_v9  ;;  %v243_v19 = vmul.f32 0.5, %v231_v10  ;;  %v218_v4 = vmax.f32 %v808_v32, 0.0  ;;  %v591_v32 = vld [vmem:[%s1019_s2 + $0x48] sm:$0xff] }
  0xb4   :  { %v583_v20 = vmul.f32 -1.442695, %v285_v13  ;;  %v244_v22 = vmul.f32 0.5, %v232_v14  ;;  %v245_v23 = vmul.f32 0.5, %v233_v15  ;;  %v219_v5 = vmax.f32 %v810_v33, 0.0 }
  0xb5   :  { %v611_v24 = vpop.eup %610  ;;  %618 = vpow2.f32 %v582_v16  ;;  %v260_v26 = vmul.f32 1.442695, %v242_v18  ;;  %v262_v27 = vmul.f32 1.442695, %v243_v19  ;;  %v220_v7 = vmax.f32 %v812_v34, 0.0 }
  0xb6   :  { %v613_v38 = vpop.eup %612  ;;  %620 = vpow2.f32 %v583_v20  ;;  %v417_v40 = vmul.f32 %v611_v24, %v588_v17  ;;  %v264_v42 = vmul.f32 1.442695, %v244_v22  ;;  %v266_v46 = vmul.f32 1.442695, %v245_v23  ;;  %v276_v33 = vld [vmem:[%s1019_s2 + $0x20] sm:$0x3] }
  0xb7   :  { %v615_v43 = vpop.eup %614  ;;  %v418_v45 = vmul.f32 %v613_v38, %v589_v21  ;;  %622 = vpow2.f32 %v260_v26  ;;  %v221_v8 = vmax.f32 %v814_v35, 0.0  ;;  %v222_v34 = vmax.f32 %v816_v36, 0.0  ;;  %v277_v20 = vld [vmem:[%s1019_s2 + $0x28] sm:$0x3] }
  0xb8   :  { %v617_v47 = vpop.eup %616  ;;  %v423_v49 = vadd.f32 %v417_v40, %v214_v39  ;;  %v280_v50 = vmul.f32 %v615_v43, %v274_v25  ;;  %v174_v51 = vpop.f32.mrf.mxu2  ;;  %624 = vpow2.f32 %v262_v27 }
  0xb9   :  { %v424_v52 = vadd.f32 %v418_v45, %v215_v44  ;;  %v281_v53 = vmul.f32 %v617_v47, %v275_v41  ;;  %626 = vpow2.f32 %v264_v42  ;;  %v234_v56 = vmax.f32 %v174_v51, 0.0  ;;  %v209_v59 = vpop.f32.mrf.mxu3 }
  0xba   :  { %v594_v54 = vmul.f32 -1.442695, %v423_v49  ;;  %v286_v55 = vadd.f32 %v280_v50, %v216_v48  ;;  %628 = vpow2.f32 %v266_v46  ;;  %v235_v2 = vmax.f32 %v209_v59, 0.0 }
  0xbb   :  { %v619_v57 = vpop.eup %618  ;;  %v595_v29 = vmul.f32 -1.442695, %v424_v52  ;;  %v287_v58 = vadd.f32 %v281_v53, %v217_v28  ;;  %v246_v1 = vmul.f32 0.5, %v234_v56 }
  0xbc   :  { %v621_v60 = vpop.eup %620  ;;  %v842_v61 = vadd.f32 1.0, %v619_v57  ;;  %630 = vpow2.f32 %v594_v54  ;;  %v584_v30 = vmul.f32 -1.442695, %v286_v55  ;;  %v247_v15 = vmul.f32 0.5, %v235_v2 }
  0xbd   :  { %v623_v62 = vpop.eup %622  ;;  %v844_v63 = vadd.f32 1.0, %v621_v60  ;;  %632 = vpow2.f32 %v595_v29  ;;  %v585_v31 = vmul.f32 -1.442695, %v287_v58  ;;  %v268_v14 = vmul.f32 1.442695, %v246_v1 }
  0xbe   :  { %634 = vrcp.f32 %v842_v61  ;;  %v625_v3 = vpop.eup %624  ;;  %v419_v9 = vmul.f32 %v623_v62, %v590_v0  ;;  %v323_v11 = vand.u32 2147483647, %v842_v61  ;;  %v325_v12 = vand.u32 2147483648, %v842_v61 }
  0xbf   :  { %636 = vrcp.f32 %v844_v63  ;;  %v627_v6 = vpop.eup %626  ;;  %vm319_vm2 = vweird.f32 %v842_v61  ;;  %v338_v17 = vand.u32 2147483647, %v844_v63  ;;  %v340_v18 = vand.u32 2147483648, %v844_v63 }
  0xc0   :  { %638 = vpow2.f32 %v584_v30  ;;  %v629_v10 = vpop.eup %628  ;;  %v425_v35 = vadd.f32 %v419_v9, %v218_v4  ;;  %vm334_vm3 = vweird.f32 %v844_v63  ;;  %v420_v23 = vmul.f32 %v625_v3, %v591_v32 }
  0xc1   :  { %640 = vpow2.f32 %v585_v31  ;;  %v282_v24 = vmul.f32 %v627_v6, %v276_v33  ;;  %vm876_vm4 = vcmp.eq.f32.partialorder %v323_v11, 8.507059e+37  ;;  %v326_v38 = vor.u32 1.1754944e-38, %v325_v12 }
  0xc2   :  { %v631_v13 = vpop.eup %630  ;;  %v596_v41 = vmul.f32 -1.442695, %v425_v35  ;;  %v283_v42 = vmul.f32 %v629_v10, %v277_v20  ;;  %vm882_vm5 = vcmp.eq.f32.partialorder %v338_v17, 8.507059e+37  ;;  %v341_v46 = vor.u32 1.1754944e-38, %v340_v18 }
  0xc3   :  { %v633_v16 = vpop.eup %632  ;;  %v867_v19 = vadd.f32 1.0, %v631_v13  ;;  %v426_v48 = vadd.f32 %v420_v23, %v219_v5  ;;  %v288_v49 = vadd.f32 %v282_v24, %v220_v7  ;;  %v887_v50 = vmul.f32 1.442695, %v247_v15 }
  0xc4   :  { %v635_v21 = vpop.eup %634  ;;  %v873_v22 = vadd.f32 1.0, %v633_v16  ;;  %v289_v54 = vadd.f32 %v283_v42, %v221_v8 }
  0xc5   :  { %v637_v25 = vpop.eup %636  ;;  %v315_v26 = vmul.f32 %v635_v21, %v842_v61  ;;  %642 = vrcp.f32 %v867_v19  ;;  %vm320_vm6 = vweird.f32 %v635_v21  ;;  %v462_v57 = vand.u32 2147483647, %v867_v19 }
  0xc6   :  { %v639_v39 = vpop.eup %638  ;;  %v330_v40 = vmul.f32 %v637_v25, %v844_v63  ;;  %644 = vpow2.f32 %v268_v14  ;;  %vm335_vm7 = vweird.f32 %v637_v25  ;;  %v464_v29 = vand.u32 2147483648, %v867_v19  ;;  %vm321_vm8 = vmor %vm319_vm2, %vm320_vm6 }
  0xc7   :  { %v641_v43 = vpop.eup %640  ;;  %v316_v44 = vsub.f32 1.0, %v315_v26  ;;  %646 = vrcp.f32 %v873_v22  ;;  %v889_v28 = vadd.f32 1.0, %v639_v39  ;;  %vm458_vm9 = vweird.f32 %v867_v19  ;;  %vm336_vm10 = vmor %vm334_vm3, %vm335_vm7  ;;  %v592_v26 = vld [vmem:[%s1019_s2 + $0x50] sm:$0x3] }
  0xc8   :  { %v331_v47 = vsub.f32 1.0, %v330_v40  ;;  %v891_v52 = vadd.f32 1.0, %v641_v43  ;;  %648 = vpow2.f32 %v596_v41  ;;  %v597_v30 = vmul.f32 -1.442695, %v426_v48 }
  0xc9   :  { %v317_v51 = vmul.f32 %v635_v21, %v316_v44  ;;  %650 = vrcp.f32 %v889_v28  ;;  %v477_v0 = vand.u32 2147483647, %v873_v22  ;;  %v479_v1 = vand.u32 2147483648, %v873_v22 }
  0xca   :  { %v332_v53 = vmul.f32 %v637_v25, %v331_v47  ;;  %652 = vrcp.f32 %v891_v52  ;;  %vm916_vm11 = vcmp.eq.f32.partialorder %v462_v57, 8.507059e+37  ;;  %v465_v6 = vor.u32 1.1754944e-38, %v464_v29 }
  0xcb   :  { %v643_v55 = vpop.eup %642  ;;  %v318_v56 = vadd.f32 %v635_v21, %v317_v51  ;;  %vm473_vm12 = vweird.f32 %v873_v22  ;;  %654 = vpow2.f32 %v597_v30  ;;  %vm924_vm15 = vcmp.eq.f32.partialorder %v477_v0, 8.507059e+37 }
  0xcc   :  { %v896_v58 = vpop.eup %644  ;;  %v333_v59 = vadd.f32 %v637_v25, %v332_v53  ;;  %v454_v60 = vmul.f32 %v643_v55, %v867_v19  ;;  %vm459_vm13 = vweird.f32 %v643_v55  ;;  %v480_v12 = vor.u32 1.1754944e-38, %v479_v1  ;;  %v593_v1 = vld [vmem:[%s1019_s2 + $0x58] sm:$0x3] }
  0xcd   :  { %v647_v62 = vpop.eup %646  ;;  %v322_v31 = vsel %vm321_vm8, %v635_v21, %v318_v56  ;;  %v586_v14 = vmul.f32 -1.442695, %v288_v49  ;;  %vm460_vm0 = vmor %vm458_vm9, %vm459_vm13  ;;  %vm349_vm1 = vweird.f32 %v889_v28  ;;  %v353_v16 = vand.u32 2147483647, %v889_v28 }
  0xce   :  { %v327_v61 = vsel %vm876_vm4, %v326_v38, %v322_v31  ;;  %v337_v2 = vsel %vm336_vm10, %v637_v25, %v333_v59  ;;  %v455_v3 = vsub.f32 1.0, %v454_v60  ;;  %v469_v4 = vmul.f32 %v647_v62, %v873_v22  ;;  %v649_v7 = vpop.eup %648 }
  0xcf   :  { %404 = vst [vmem:[%s1020_s3] sm:$0xff] %v327_v61  ;;  %v342_v63 = vsel %vm882_vm5, %v341_v46, %v337_v2  ;;  %v651_v10 = vpop.eup %650  ;;  %vm474_vm14 = vweird.f32 %v647_v62  ;;  %v928_v32 = vadd.f32 1.0, %v649_v7  ;;  %v587_v17 = vmul.f32 -1.442695, %v289_v54 }
  0xd0   :  { %405 = vst [vmem:[%s1020_s3 + $0x8] sm:$0xff] %v342_v63  ;;  %v456_v8 = vmul.f32 %v643_v55, %v455_v3  ;;  %v470_v9 = vsub.f32 1.0, %v469_v4  ;;  %v345_v35 = vmul.f32 %v651_v10, %v889_v28  ;;  %v653_v15 = vpop.eup %652  ;;  %vm475_vm2 = vmor %vm473_vm12, %vm474_vm14  ;;  %vm350_vm3 = vweird.f32 %v651_v10 }
  0xd1   :  { %656 = vrcp.f32 %v928_v32  ;;  %v360_v23 = vmul.f32 %v653_v15, %v891_v52  ;;  %v355_v19 = vand.u32 2147483648, %v889_v28  ;;  %v368_v25 = vand.u32 2147483647, %v891_v52  ;;  %v655_v27 = vpop.eup %654  ;;  %vm351_vm5 = vmor %vm349_vm1, %vm350_vm3 }
  0xd2   :  { %v457_v33 = vadd.f32 %v643_v55, %v456_v8  ;;  %v471_v13 = vmul.f32 %v647_v62, %v470_v9  ;;  %v346_v21 = vsub.f32 1.0, %v345_v35  ;;  %658 = vpow2.f32 %v586_v14 }
  0xd3   :  { %v361_v40 = vsub.f32 1.0, %v360_v23  ;;  %v370_v41 = vand.u32 2147483648, %v891_v52  ;;  %v953_v42 = vadd.f32 1.0, %v655_v27  ;;  %660 = vpow2.f32 %v587_v17 }
  0xd4   :  { %v461_v18 = vsel %vm460_vm0, %v643_v55, %v457_v33  ;;  %v472_v20 = vadd.f32 %v647_v62, %v471_v13  ;;  %v347_v39 = vmul.f32 %v651_v10, %v346_v21  ;;  %vm365_vm4 = vweird.f32 %v653_v15 }
  0xd5   :  { %v466_v24 = vsel %vm916_vm11, %v465_v6, %v461_v18  ;;  %v362_v44 = vmul.f32 %v653_v15, %v361_v40  ;;  %v421_v45 = vmul.f32 %v896_v58, %v592_v26  ;;  %vm354_vm6 = vcmp.eq.f32.partialorder %v353_v16, 8.507059e+37 }
  0xd6   :  { %600 = vst [vmem:[%s1020_s3 + $0x30] sm:$0xff] %v466_v24  ;;  %v476_v38 = vsel %vm475_vm2, %v647_v62, %v472_v20  ;;  %v348_v43 = vadd.f32 %v651_v10, %v347_v39  ;;  %v356_v47 = vor.u32 1.1754944e-38, %v355_v19  ;;  %vm364_vm7 = vweird.f32 %v891_v52 }
  0xd7   :  { %v481_v22 = vsel %vm924_vm15, %v480_v12, %v476_v38  ;;  %v657_v46 = vpop.eup %656  ;;  %662 = vrcp.f32 %v953_v42  ;;  %v363_v49 = vadd.f32 %v653_v15, %v362_v44  ;;  %vm366_vm8 = vmor %vm364_vm7, %vm365_vm4  ;;  %v371_v54 = vor.u32 1.1754944e-38, %v370_v41 }
  0xd8   :  { %601 = vst [vmem:[%s1020_s3 + $0x38] sm:$0xff] %v481_v22  ;;  %v352_v48 = vsel %vm351_vm5, %v651_v10, %v348_v43  ;;  %v484_v51 = vmul.f32 %v657_v46, %v928_v32  ;;  %664 = vpow2.f32 %v887_v50  ;;  %v427_v55 = vadd.f32 %v421_v45, %v222_v34  ;;  %v659_v28 = vpop.eup %658 }
  0xd9   :  { %v357_v53 = vsel %vm354_vm6, %v356_v47, %v352_v48  ;;  %v367_v52 = vsel %vm366_vm8, %v653_v15, %v363_v49  ;;  %vm369_vm9 = vcmp.eq.f32.partialorder %v368_v25, 8.507059e+37  ;;  %v661_v57 = vpop.eup %660  ;;  %v492_v58 = vand.u32 2147483647, %v928_v32 }
  0xda   :  { %406 = vst [vmem:[%s1020_s3 + $0x10] sm:$0xff] %v357_v53  ;;  %v485_v56 = vsub.f32 1.0, %v484_v51  ;;  %v372_v29 = vsel %vm369_vm9, %v371_v54, %v367_v52  ;;  %v494_v50 = vand.u32 2147483648, %v928_v32  ;;  %v973_v59 = vadd.f32 1.0, %v659_v28 }
  0xdb   :  { %407 = vst [vmem:[%s1020_s3 + $0x18] sm:$0xff] %v372_v29  ;;  %vm489_vm10 = vweird.f32 %v657_v46  ;;  %v978_v34 = vadd.f32 1.0, %v661_v57  ;;  %v598_v60 = vmul.f32 -1.442695, %v427_v55  ;;  %vm488_vm11 = vweird.f32 %v928_v32 }
  0xdc   :  { %v486_v36 = vmul.f32 %v657_v46, %v485_v56  ;;  %666 = vrcp.f32 %v973_v59  ;;  %vm490_vm12 = vmor %vm488_vm11, %vm489_vm10  ;;  %v495_v61 = vor.u32 1.1754944e-38, %v494_v50  ;;  %vm493_vm13 = vcmp.eq.f32.partialorder %v492_v58, 8.507059e+37 }
  0xdd   :  { %v663_v30 = vpop.eup %662  ;;  %668 = vrcp.f32 %v978_v34  ;;  %v223_v4 = vmax.f32 %v818_v37, 0.0  ;;  %v509_v5 = vand.u32 2147483648, %v953_v42  ;;  %v507_v8 = vand.u32 2147483647, %v953_v42 }
  0xde   :  { %v665_v62 = vpop.eup %664  ;;  %v487_v31 = vadd.f32 %v657_v46, %v486_v36  ;;  %v499_v0 = vmul.f32 %v663_v30, %v953_v42  ;;  %670 = vpow2.f32 %v598_v60  ;;  %vm504_vm14 = vweird.f32 %v663_v30 }
  0xdf   :  { %v422_v6 = vmul.f32 %v665_v62, %v593_v1  ;;  %vm503_vm15 = vweird.f32 %v953_v42  ;;  %v510_v32 = vor.u32 1.1754944e-38, %v509_v5  ;;  %vm508_vm1 = vcmp.eq.f32.partialorder %v507_v8, 8.507059e+37 }
  0xe0   :  { %v491_v2 = vsel %vm490_vm12, %v657_v46, %v487_v31  ;;  %v500_v3 = vsub.f32 1.0, %v499_v0  ;;  %vm505_vm0 = vmor %vm503_vm15, %vm504_vm14  ;;  %v385_v16 = vand.u32 2147483648, %v973_v59  ;;  %v383_v23 = vand.u32 2147483647, %v973_v59 }
  0xe1   :  { %v496_v63 = vsel %vm493_vm13, %v495_v61, %v491_v2  ;;  %v428_v10 = vadd.f32 %v422_v6, %v223_v4  ;;  %v400_v24 = vand.u32 2147483648, %v978_v34  ;;  %v398_v25 = vand.u32 2147483647, %v978_v34 }
  0xe2   :  { %602 = vst [vmem:[%s1020_s3 + $0x40] sm:$0xff] %v496_v63  ;;  %v501_v7 = vmul.f32 %v663_v30, %v500_v3  ;;  %v667_v9 = vpop.eup %666  ;;  %vm379_vm4 = vweird.f32 %v973_v59  ;;  %v386_v27 = vor.u32 1.1754944e-38, %v385_v16  ;;  %vm394_vm6 = vweird.f32 %v978_v34 }
  0xe3   :  { %v669_v11 = vpop.eup %668  ;;  %v375_v37 = vmul.f32 %v667_v9, %v973_v59  ;;  %v599_v13 = vmul.f32 -1.442695, %v428_v10  ;;  %vm380_vm2 = vweird.f32 %v667_v9  ;;  %vm384_vm7 = vcmp.eq.f32.partialorder %v383_v23, 8.507059e+37 }
  0xe4   :  { %v502_v12 = vadd.f32 %v663_v30, %v501_v7  ;;  %v390_v33 = vmul.f32 %v669_v11, %v978_v34  ;;  %v671_v35 = vpop.eup %670  ;;  %vm395_vm3 = vweird.f32 %v669_v11  ;;  %vm381_vm5 = vmor %vm379_vm4, %vm380_vm2  ;;  %v401_v40 = vor.u32 1.1754944e-38, %v400_v24 }
  0xe5   :  { %v376_v15 = vsub.f32 1.0, %v375_v37  ;;  %v451_v20 = vadd.f32 1.0, %v671_v35  ;;  %672 = vpow2.f32 %v599_v13  ;;  %vm396_vm8 = vmor %vm394_vm6, %vm395_vm3  ;;  %vm399_vm9 = vcmp.eq.f32.partialorder %v398_v25, 8.507059e+37 }
  0xe6   :  { %v506_v14 = vsel %vm505_vm0, %v663_v30, %v502_v12  ;;  %v391_v18 = vsub.f32 1.0, %v390_v33 }
  0xe7   :  { %v511_v17 = vsel %vm508_vm1, %v510_v32, %v506_v14  ;;  %v377_v21 = vmul.f32 %v667_v9, %v376_v15  ;;  %674 = vrcp.f32 %v451_v20  ;;  %v524_v48 = vand.u32 2147483648, %v451_v20 }
  0xe8   :  { %603 = vst [vmem:[%s1020_s3 + $0x48] sm:$0xff] %v511_v17  ;;  %v392_v19 = vmul.f32 %v669_v11, %v391_v18  ;;  %v522_v51 = vand.u32 2147483647, %v451_v20  ;;  %vm518_vm11 = vweird.f32 %v451_v20 }
  0xe9   :  { %v378_v26 = vadd.f32 %v667_v9, %v377_v21  ;;  %v525_v55 = vor.u32 1.1754944e-38, %v524_v48 }
  0xea   :  { %v393_v38 = vadd.f32 %v669_v11, %v392_v19  ;;  %vm523_vm13 = vcmp.eq.f32.partialorder %v522_v51, 8.507059e+37 }
  0xeb   :  { %v382_v39 = vsel %vm381_vm5, %v667_v9, %v378_v26  ;;  %v673_v22 = vpop.eup %672 }
  0xec   :  { %v387_v41 = vsel %vm384_vm7, %v386_v27, %v382_v39  ;;  %v397_v42 = vsel %vm396_vm8, %v669_v11, %v393_v38  ;;  %v452_v44 = vadd.f32 1.0, %v673_v22 }
  0xed   :  { %408 = vst [vmem:[%s1020_s3 + $0x20] sm:$0x3] %v387_v41  ;;  %v402_v43 = vsel %vm399_vm9, %v401_v40, %v397_v42  ;;  %v675_v45 = vpop.eup %674 }
  0xee   :  { %409 = vst [vmem:[%s1020_s3 + $0x28] sm:$0x3] %v402_v43  ;;  %v514_v46 = vmul.f32 %v675_v45, %v451_v20  ;;  %676 = vrcp.f32 %v452_v44  ;;  %vm519_vm10 = vweird.f32 %v675_v45  ;;  %v539_v29 = vand.u32 2147483648, %v452_v44 }
  0xef   :  { %vm520_vm12 = vmor %vm518_vm11, %vm519_vm10  ;;  %v537_v50 = vand.u32 2147483647, %v452_v44  ;;  %vm533_vm15 = vweird.f32 %v452_v44 }
  0xf0   :  { %v515_v47 = vsub.f32 1.0, %v514_v46  ;;  %v540_v36 = vor.u32 1.1754944e-38, %v539_v29 }
  0xf1   :  { %vm538_vm1 = vcmp.eq.f32.partialorder %v537_v50, 8.507059e+37 }
  0xf2   :  { %v516_v49 = vmul.f32 %v675_v45, %v515_v47 }
  0xf4   :  { %v677_v53 = vpop.eup %676  ;;  %v517_v54 = vadd.f32 %v675_v45, %v516_v49 }
  0xf5   :  { %v529_v28 = vmul.f32 %v677_v53, %v452_v44  ;;  %vm534_vm14 = vweird.f32 %v677_v53 }
  0xf6   :  { %v521_v52 = vsel %vm520_vm12, %v675_v45, %v517_v54  ;;  %vm535_vm0 = vmor %vm533_vm15, %vm534_vm14 }
  0xf7   :  { %v526_v56 = vsel %vm523_vm13, %v525_v55, %v521_v52  ;;  %v530_v57 = vsub.f32 1.0, %v529_v28 }
  0xf8   :  { %604 = vst [vmem:[%s1020_s3 + $0x50] sm:$0x3] %v526_v56 }
  0xf9   :  { %v531_v58 = vmul.f32 %v677_v53, %v530_v57 }
  0xfb   :  { %v532_v59 = vadd.f32 %v677_v53, %v531_v58 }
  0xfd   :  { %v536_v34 = vsel %vm535_vm0, %v677_v53, %v532_v59 }
  0xfe   :  { %v541_v60 = vsel %vm538_vm1, %v540_v36, %v536_v34 }
  0xff   :  { %605 = vst [vmem:[%s1020_s3 + $0x58] sm:$0x3] %v541_v60 }

</bundles_post_ra>
